<compile_context>
chip_gen: v5e
topology: v5e:2x2
jax: 0.10.0
libtpu: 0.0.40
codegen_flags: <defaults>
</compile_context>

<pallas_src>
import functools

import jax
import jax.numpy as jnp
from jax.experimental import pallas as pl
from jax.experimental.pallas import tpu as pltpu


# ---------------------------------------------------------------------------
# Fused MHSA kernel: one grid step == one batch element.
# ---------------------------------------------------------------------------
def mhsa_kernel(num_heads, x_ref, wqkv_ref, wout_ref, bout_ref, o_ref):
    x = x_ref[0].astype(jnp.float32)                       # (N, C)
    N, C = x.shape
    d = C // num_heads

    # Batched QKV projection: (H, N, C) @ (H, C, 3d) -> (H, N, 3d), f32 acc.
    xb = jnp.broadcast_to(x.astype(jnp.bfloat16)[None], (num_heads, N, C))
    qkv = jnp.einsum("hnc,hce->hne", xb, wqkv_ref[...],
                     preferred_element_type=jnp.float32)
    q = qkv[:, :, :d]                  # 1/sqrt(d) already folded into weights
    k = qkv[:, :, d:2 * d]
    v = qkv[:, :, 2 * d:]

    # Scores + softmax (f32 math), batched over heads.
    s = jnp.einsum("hnd,hmd->hnm",
                   q.astype(jnp.bfloat16), k.astype(jnp.bfloat16),
                   preferred_element_type=jnp.float32)      # (H, N, N)
    s = s - jnp.max(s, axis=-1, keepdims=True)
    p = jnp.exp(s)
    p = p * pl.reciprocal(jnp.sum(p, axis=-1, keepdims=True), approx=True)

    # Attention-weighted values, batched over heads.
    pv = jnp.einsum("hnm,hmd->hnd",
                    p.astype(jnp.bfloat16), v.astype(jnp.bfloat16),
                    preferred_element_type=jnp.float32)     # (H, N, d)

    # Output projection with the head merge folded in:
    #   out = sum_h pv[h] @ W_out[h*d:(h+1)*d, :] + b_out
    out_h = jnp.einsum("hnd,hdc->hnc",
                       pv.astype(jnp.bfloat16), wout_ref[...],
                       preferred_element_type=jnp.float32)  # (H, N, C)
    out = jnp.sum(out_h, axis=0) + bout_ref[...]            # (N, C)
    o_ref[0] = out.astype(o_ref.dtype)


# ---------------------------------------------------------------------------
# pallas_call wrapper
# ---------------------------------------------------------------------------
def mhsa_pallas(x, wqkv_h, wout_h, b_out, num_heads):
    B, N, C = x.shape
    H, _, E = wqkv_h.shape           # (H, C, 3d)
    d = C // num_heads
    kern = functools.partial(mhsa_kernel, num_heads)
    return pl.pallas_call(
        kern,
        out_shape=jax.ShapeDtypeStruct((B, N, C), jnp.float32),
        grid=(B,),
        in_specs=[
            pl.BlockSpec((1, N, C), lambda i: (i, 0, 0)),   # per-batch tokens
            pl.BlockSpec((H, C, E), lambda i: (0, 0, 0)),   # resident packed QKV weights
            pl.BlockSpec((H, d, C), lambda i: (0, 0, 0)),   # resident packed out-proj
            pl.BlockSpec((1, C), lambda i: (0, 0)),         # out-proj bias
        ],
        out_specs=pl.BlockSpec((1, N, C), lambda i: (i, 0, 0)),
        compiler_params=pltpu.CompilerParams(
            dimension_semantics=("parallel",)),             # B>=2 -> both v7x cores
    )(x, wqkv_h, wout_h, b_out)


# ---------------------------------------------------------------------------
# Host-side weight packing (per-head layout, scale folded into Q, bf16 cast)
# and the jitted public forward.
# ---------------------------------------------------------------------------
def _pack_params(params, num_heads):
    w_qkv = params["w_qkv"]            # (C, 3C)  == torch to_qkv.weight.T
    w_out = params["w_out"]            # (C, C)   == torch to_out.weight.T
    b_out = params["b_out"]            # (C,)
    C = w_qkv.shape[0]
    d = C // num_heads
    scale = float(d) ** -0.5
    wq = (w_qkv[:, :C] * scale).reshape(C, num_heads, d)    # fold 1/sqrt(d) into Q
    wk = w_qkv[:, C:2 * C].reshape(C, num_heads, d)
    wv = w_qkv[:, 2 * C:].reshape(C, num_heads, d)
    wqkv_h = jnp.concatenate([wq, wk, wv], axis=-1)         # (C, H, 3d)
    wqkv_h = jnp.transpose(wqkv_h, (1, 0, 2)).astype(jnp.bfloat16)   # (H, C, 3d)
    wout_h = w_out.reshape(num_heads, d, C).astype(jnp.bfloat16)     # (H, d, C)
    return wqkv_h, wout_h, b_out.reshape(1, C).astype(jnp.float32)


@functools.partial(jax.jit, static_argnames=("num_heads",))
def mhsa_forward(params, x, num_heads):
    wqkv_h, wout_h, b_out = _pack_params(params, num_heads)
    return mhsa_pallas(x, wqkv_h, wout_h, b_out, num_heads)


# ---------------------------------------------------------------------------
# Pure-JAX reference mirroring the PyTorch module exactly (f32 throughout).
# ---------------------------------------------------------------------------
def mhsa_reference(params, x, num_heads):
    B, N, C = x.shape
    d = C // num_heads
    scale = float(d) ** -0.5
    qkv = x @ params["w_qkv"]                                # (B, N, 3C)
    q, k, v = jnp.split(qkv, 3, axis=-1)

    def to_heads(t):
        return t.reshape(B, N, num_heads, d).transpose(0, 2, 1, 3)

    q = to_heads(q) * scale
    k = to_heads(k)
    v = to_heads(v)
    s = jnp.einsum("bhnc,bhmc->bhnm", q, k)
    p = jax.nn.softmax(s, axis=-1)
    vh = jnp.einsum("bhnm,bhmc->bhnc", p, v)
    vh = vh.transpose(0, 2, 1, 3).reshape(B, N, C)
    return vh @ params["w_out"] + params["b_out"]


# ---------------------------------------------------------------------------
if __name__ == "__main__":
    B, N, C, num_heads = 2, 16, 32, 4        # (batch, tokens, channels), 4 heads

    key = jax.random.PRNGKey(0)
    pk1, pk2, pk3, xk = jax.random.split(key, 4)
    s = float(C) ** -0.5
    params = {
        "w_qkv": jax.random.normal(pk1, (C, 3 * C), jnp.float32) * s,
        "w_out": jax.random.normal(pk2, (C, C), jnp.float32) * s,
        "b_out": jax.random.normal(pk3, (C,), jnp.float32) * 0.02,
    }
    x = jax.random.normal(xk, (B, N, C), jnp.float32)

    out = jax.block_until_ready(mhsa_forward(params, x, num_heads=num_heads))
    assert out.shape == (B, N, C), out.shape
    assert bool(jnp.all(jnp.isfinite(out)))

    # Correctness vs. the f32 reference (tolerance accounts for bf16 MXU inputs
    # and the approx reciprocal in the softmax denominator).
    ref = mhsa_reference(params, x, num_heads)
    err = float(jnp.max(jnp.abs(out - ref)))
    assert err < 1e-1, f"max |pallas - reference| = {err}"

    print("KERNEL_OK")
</pallas_src>

<mosaic_0001>
module attributes {stable_mosaic.version = 11 : i64} {
  func.func @mhsa_kernel(%arg0: i32, %arg1: memref<1x16x32xf32, #tpu.memory_space<vmem>>, %arg2: memref<4x32x24xbf16, #tpu.memory_space<vmem>>, %arg3: memref<4x8x32xbf16, #tpu.memory_space<vmem>>, %arg4: memref<1x32xf32, #tpu.memory_space<vmem>>, %arg5: memref<1x16x32xf32, #tpu.memory_space<vmem>>) attributes {dimension_semantics = [#tpu.dimension_semantics<parallel>], iteration_bounds = array<i64: 2>, scalar_prefetch = 0 : i64, scratch_operands = 0 : i64, tpu.core_type = #tpu.core_type<tc>, window_params = [{transform_indices = @transform_0, window_bounds = array<i64: 1, 16, 32>}, {pipeline_mode = #tpu.pipeline_mode<synchronous>, transform_indices = @transform_1, window_bounds = array<i64: 4, 32, 24>}, {pipeline_mode = #tpu.pipeline_mode<synchronous>, transform_indices = @transform_2, window_bounds = array<i64: 4, 8, 32>}, {pipeline_mode = #tpu.pipeline_mode<synchronous>, transform_indices = @transform_3, window_bounds = array<i64: 1, 32>}, {transform_indices = @transform_4, window_bounds = array<i64: 1, 16, 32>}]} {
    %c0 = arith.constant 0 : index
    %c0_0 = arith.constant 0 : index
    %c0_1 = arith.constant 0 : index
    %0 = vector.load %arg1[%c0, %c0_0, %c0_1] : memref<1x16x32xf32, #tpu.memory_space<vmem>>, vector<1x16x32xf32>
    %1 = vector.shape_cast %0 : vector<1x16x32xf32> to vector<16x32xf32>
    %2 = arith.truncf %1 : vector<16x32xf32> to vector<16x32xbf16>
    %3 = vector.shape_cast %2 : vector<16x32xbf16> to vector<1x16x32xbf16>
    %4 = vector.shape_cast %3 : vector<1x16x32xbf16> to vector<1x16x32xbf16>
    %5 = vector.broadcast %4 : vector<1x16x32xbf16> to vector<4x16x32xbf16>
    %c0_2 = arith.constant 0 : index
    %c0_3 = arith.constant 0 : index
    %c0_4 = arith.constant 0 : index
    %6 = vector.load %arg2[%c0_2, %c0_3, %c0_4] : memref<4x32x24xbf16, #tpu.memory_space<vmem>>, vector<4x32x24xbf16>
    "tpu.trace_start"() <{level = 10 : i32, message = "hnc,hce->hne"}> : () -> ()
    %cst = arith.constant dense<0.000000e+00> : vector<4x16x24xf32>
    %7 = tpu.matmul %5, %6, %cst {dimension_numbers = #tpu.dot_dimension_numbers<[2], [1], [1], [2], [0, 0, 0, 1, 1, 2], [0], [0]>} : vector<4x16x32xbf16>, vector<4x32x24xbf16>, vector<4x16x24xf32> -> vector<4x16x24xf32>
    "tpu.trace_stop"() : () -> ()
    %8 = vector.extract_strided_slice %7 {offsets = [0, 0, 0], sizes = [4, 16, 8], strides = [1, 1, 1]} : vector<4x16x24xf32> to vector<4x16x8xf32>
    %9 = vector.extract_strided_slice %7 {offsets = [0, 0, 8], sizes = [4, 16, 8], strides = [1, 1, 1]} : vector<4x16x24xf32> to vector<4x16x8xf32>
    %10 = vector.extract_strided_slice %7 {offsets = [0, 0, 16], sizes = [4, 16, 8], strides = [1, 1, 1]} : vector<4x16x24xf32> to vector<4x16x8xf32>
    %11 = arith.truncf %8 : vector<4x16x8xf32> to vector<4x16x8xbf16>
    %12 = arith.truncf %9 : vector<4x16x8xf32> to vector<4x16x8xbf16>
    "tpu.trace_start"() <{level = 10 : i32, message = "hnd,hmd->hnm"}> : () -> ()
    %cst_5 = arith.constant dense<0.000000e+00> : vector<4x16x16xf32>
    %13 = tpu.matmul %11, %12, %cst_5 {dimension_numbers = #tpu.dot_dimension_numbers<[2], [2], [1], [1], [0, 0, 0, 1, 1, 1], [0], [0]>} : vector<4x16x8xbf16>, vector<4x16x8xbf16>, vector<4x16x16xf32> -> vector<4x16x16xf32>
    "tpu.trace_stop"() : () -> ()
    %cst_6 = arith.constant dense<0xFF800000> : vector<4x16xf32>
    %14 = vector.multi_reduction <maximumf>, %13, %cst_6 [2] : vector<4x16x16xf32> to vector<4x16xf32>
    %15 = vector.shape_cast %14 : vector<4x16xf32> to vector<4x16x1xf32>
    %16 = vector.broadcast %15 : vector<4x16x1xf32> to vector<4x16x16xf32>
    %17 = arith.subf %13, %16 : vector<4x16x16xf32>
    %18 = math.exp %17 : vector<4x16x16xf32>
    %cst_7 = arith.constant dense<0.000000e+00> : vector<4x16xf32>
    %19 = vector.multi_reduction <add>, %18, %cst_7 [2] : vector<4x16x16xf32> to vector<4x16xf32>
    %20 = vector.shape_cast %19 : vector<4x16xf32> to vector<4x16x1xf32>
    %21 = tpu.reciprocal %20 {approx = true} : vector<4x16x1xf32> -> vector<4x16x1xf32>
    %22 = vector.broadcast %21 : vector<4x16x1xf32> to vector<4x16x16xf32>
    %23 = arith.mulf %18, %22 : vector<4x16x16xf32>
    %24 = arith.truncf %23 : vector<4x16x16xf32> to vector<4x16x16xbf16>
    %25 = arith.truncf %10 : vector<4x16x8xf32> to vector<4x16x8xbf16>
    "tpu.trace_start"() <{level = 10 : i32, message = "hnm,hmd->hnd"}> : () -> ()
    %cst_8 = arith.constant dense<0.000000e+00> : vector<4x16x8xf32>
    %26 = tpu.matmul %24, %25, %cst_8 {dimension_numbers = #tpu.dot_dimension_numbers<[2], [1], [1], [2], [0, 0, 0, 1, 1, 2], [0], [0]>} : vector<4x16x16xbf16>, vector<4x16x8xbf16>, vector<4x16x8xf32> -> vector<4x16x8xf32>
    "tpu.trace_stop"() : () -> ()
    %27 = arith.truncf %26 : vector<4x16x8xf32> to vector<4x16x8xbf16>
    %c0_9 = arith.constant 0 : index
    %c0_10 = arith.constant 0 : index
    %c0_11 = arith.constant 0 : index
    %28 = vector.load %arg3[%c0_9, %c0_10, %c0_11] : memref<4x8x32xbf16, #tpu.memory_space<vmem>>, vector<4x8x32xbf16>
    "tpu.trace_start"() <{level = 10 : i32, message = "hnd,hdc->hnc"}> : () -> ()
    %cst_12 = arith.constant dense<0.000000e+00> : vector<4x16x32xf32>
    %29 = tpu.matmul %27, %28, %cst_12 {dimension_numbers = #tpu.dot_dimension_numbers<[2], [1], [1], [2], [0, 0, 0, 1, 1, 2], [0], [0]>} : vector<4x16x8xbf16>, vector<4x8x32xbf16>, vector<4x16x32xf32> -> vector<4x16x32xf32>
    "tpu.trace_stop"() : () -> ()
    %cst_13 = arith.constant dense<0.000000e+00> : vector<16x32xf32>
    %30 = vector.multi_reduction <add>, %29, %cst_13 [0] : vector<4x16x32xf32> to vector<16x32xf32>
    %c0_14 = arith.constant 0 : index
    %c0_15 = arith.constant 0 : index
    %31 = vector.load %arg4[%c0_14, %c0_15] : memref<1x32xf32, #tpu.memory_space<vmem>>, vector<1x32xf32>
    %32 = vector.broadcast %31 : vector<1x32xf32> to vector<16x32xf32>
    %33 = arith.addf %30, %32 : vector<16x32xf32>
    %c0_16 = arith.constant 0 : index
    %c0_17 = arith.constant 0 : index
    %c0_18 = arith.constant 0 : index
    %34 = vector.load %arg5[%c0_16, %c0_17, %c0_18] : memref<1x16x32xf32, #tpu.memory_space<vmem>>, vector<1x16x32xf32>
    %35 = vector.shape_cast %34 : vector<1x16x32xf32> to vector<16x32xf32>
    %36 = vector.shape_cast %33 : vector<16x32xf32> to vector<1x16x32xf32>
    tpu.vector_store %arg5[%c0_16, %c0_17, %c0_18], %36 {strides = array<i32>} : memref<1x16x32xf32, #tpu.memory_space<vmem>>, vector<1x16x32xf32>,
    return
  }
  func.func @transform_0(%arg0: i32) -> (i32, i32, i32) {
    %c0_i32 = arith.constant 0 : i32
    %c0_i32_0 = arith.constant 0 : i32
    %c0_i32_1 = arith.constant 0 : i32
    return %arg0, %c0_i32, %c0_i32_0 : i32, i32, i32
  }
  func.func @transform_1(%arg0: i32) -> (i32, i32, i32) {
    %c0_i32 = arith.constant 0 : i32
    %c0_i32_0 = arith.constant 0 : i32
    %c0_i32_1 = arith.constant 0 : i32
    %c0_i32_2 = arith.constant 0 : i32
    return %c0_i32, %c0_i32_0, %c0_i32_1 : i32, i32, i32
  }
  func.func @transform_2(%arg0: i32) -> (i32, i32, i32) {
    %c0_i32 = arith.constant 0 : i32
    %c0_i32_0 = arith.constant 0 : i32
    %c0_i32_1 = arith.constant 0 : i32
    %c0_i32_2 = arith.constant 0 : i32
    return %c0_i32, %c0_i32_0, %c0_i32_1 : i32, i32, i32
  }
  func.func @transform_3(%arg0: i32) -> (i32, i32) {
    %c0_i32 = arith.constant 0 : i32
    %c0_i32_0 = arith.constant 0 : i32
    %c0_i32_1 = arith.constant 0 : i32
    return %c0_i32, %c0_i32_0 : i32, i32
  }
  func.func @transform_4(%arg0: i32) -> (i32, i32, i32) {
    %c0_i32 = arith.constant 0 : i32
    %c0_i32_0 = arith.constant 0 : i32
    %c0_i32_1 = arith.constant 0 : i32
    return %arg0, %c0_i32, %c0_i32_0 : i32, i32, i32
  }
}

</mosaic_0001>

<bundles_post_ra>
// kernel: mhsa_forward.1
= control target key start
LH: loop header
LB: loop body
LE: loop exit
PB: predicated region body
PF: predicated region fallthrough
CT: control target
= control target key end

     0   :  { %9 = vsyncpa [#allocation3], 0  ;;  %s1309_s0 = inlined_call_operand.vmem [shape: f32[2,16,32], index: 0, kind: input, shape index: {}]   ;;  %s1310_s1 = inlined_call_operand.vmem [shape: bf16[4,32,24], index: 1, kind: input, shape index: {}]   ;;  %s1311_s2 = inlined_call_operand.vmem [shape: bf16[4,8,32], index: 2, kind: input, shape index: {}]   ;;  %s1312_s3 = inlined_call_operand.vmem [shape: f32[1,32], index: 3, kind: input, shape index: {}]   ;;  %s1313_s4 = inlined_call_operand.hbm [shape: f32[2,16,32], index: 4, kind: output, shape index: {}]  }
   0x1   :  { %11 = vsyncpa [#allocation3 + $0x1], 0  ;;  %s1096_s15 = smov 0   ;;  %s1098_s16 = smov 0  }
   0x2   :  { %s1100_s17 = smov 0   ;;  %s1102_s18 = smov 0  }
   0x3 LB: > { %s1117_s19 = sadd.s32 4294967295, %s1065_s18   ;;  %s857_s20 = sadd.s32 4294967294, %s1065_s18   ;;  %s1065_s18 = sphi %s1102_s18, %s1319_s18   ;;  %s1061_s17 = sphi %s1100_s17, %s1318_s17   ;;  %s1057_s16 = sphi %s1098_s16, %s1317_s16   ;;  %s1053_s15 = sphi %s1096_s15, %s1316_s15  }
   0x4   : > { %s1121_s21 = sadd.s32 1, %s1065_s18   ;;  %s113_s22 = sadd.s32 1, %s1061_s17 }
   0x5   : > { %s110_s23 = ssub.s32 %s1065_s18, %s1121_s21  ;;  %p123_p0 = scmp.ne.s32.totalorder %s1061_s17, %s1057_s16 }
   0x6   : > { %p111_p1 = scmp.eq.s32.totalorder %s110_s23, 0  ;;  %p124_p2 = scmp.eq.s32.totalorder %s1117_s19, 1 }
   0x7   : > { %p129_p3 = scmp.ne.s32.totalorder %s1057_s16, %s1053_s15  ;;  %p130_p4 = scmp.eq.s32.totalorder %s857_s20, 1 }
   0x8   : > { %s1132_s24 = scalar_select %p111_p1, %s1061_s17, %s113_s22  }
   0x9   : > { %p1134_p5 = por %p124_p2, %p123_p0  ;;  %p1138_p6 = por %p130_p4, %p129_p3 }
   0xa   : > { %p860_p7 = scmp.ge.s32.totalorder %s1065_s18, 1  ;;  %p165_p8 = scmp.lt.s32.totalorder %s1065_s18, 3 }
   0xc   : > { %p166_p9 = pnand %p860_p7, %p165_p8 }
   0xd   : > { %p191_p10 = scmp.lt.s32.totalorder (!%p166_p9), %s1117_s19, 1  ;;  %s1067_s5 = smov (!%p166_p9), 120  }
   0xe   : > { %169 = sbr.rel (%p166_p9) target bundleno = 1044 (0x414), region = 36  ;;  %s1068_s6 = smov (!%p166_p9), 112  }
   0xf   : > { %s188_s20 = sand.u32 (!%p166_p9), 1, %s1057_s16   ;;  %s926_s28 = sshll.u32 (!%p166_p9), %s1117_s19, 4 }
  0x10   : > { %s861_s22 = sshll.u32 (!%p166_p9), %s188_s20, 4  ;;  %s780_s8 = scalar_lea.sflag (!%p166_p9), [#allocation3], %s188_s20 }
  0x13   : > { %v919_v0 = vld [vmem:[%s1310_s1 + $0x8] sm:$0xff]  ;;  %v921_v2 = vld [vmem:[%s1310_s1 + $0x18] sm:$0xff]  ;;  %v918_v4 = vld [vmem:[%s1310_s1] sm:$0xff]  ;;  %s192_s13 = scalar_select %p191_p10, %s1117_s19, 1  ;;  %vm234_vm0 = vcmask 261120   ;;  %vm345_vm1 = vcmask 64512  }
  0x14   : > { %v923_v1 = vld [vmem:[%s1310_s1 + $0x28] sm:$0xff]  ;;  %v925_v3 = vld [vmem:[%s1310_s1 + $0x38] sm:$0xff]  ;;  %244 = vmatpush.bf16.msra.mxu0 %v919_v0  ;;  %v922_v5 = vld [vmem:[%s1310_s1 + $0x20] sm:$0xff]  ;;  %270 = vmatpush.bf16.msra.mxu1 %v921_v2  ;;  %vm447_vm2 = vcmask 130048   ;;  %vm664_vm3 = vcmask 1043456  }
  0x15   : > { %296 = vmatpush.bf16.msra.mxu2 %v923_v1  ;;  %322 = vmatpush.bf16.msra.mxu3 %v925_v3  ;;  %v920_v6 = vld [vmem:[%s1310_s1 + $0x10] sm:$0xff]  ;;  %s917_s27 = sshll.u32 %s192_s13, 4  ;;  %s1023_s13 = scalar_lea.hbm %s1313_s4, 32 }
  0x16   : > { %v924_v7 = vld [vmem:[%s1310_s1 + $0x30] sm:$0xff]  ;;  %s195_s30 = scalar_lea.vmem %s1309_s0, %s917_s27 }
  0x17   : > { %v197_v8 = vld [vmem:[%s195_s30] sm:$0xff]  ;;  %v198_v9 = vld [vmem:[%s195_s30 + $0x8] sm:$0xff] }
  0x18   : > { %245 = vmatpush.bf16.msra.mxu0 %v918_v4  ;;  %v199_v10 = vpack.c.bf16 %v197_v8, %v197_v8  ;;  %v200_v11 = vpack.c.bf16 %v198_v9, %v198_v9  ;;  %271 = vmatpush.bf16.msra.mxu1 %v920_v6 }
  0x19   : > { %297 = vmatpush.bf16.msra.mxu2 %v922_v5  ;;  %323 = vmatpush.bf16.msra.mxu3 %v924_v7 }
  0x1a   : > { %v219_v12 = vunpack.c.l.b16 %v199_v10  ;;  %v220_v13 = vunpack.c.l.b16 %v200_v11 }
  0x1c   : > { %v221_v14 = vpack.c.b16 %v220_v13, %v219_v12 }
  0x1e   : > { %872 = vmatmul.msk.bf16.vlgmr.msra.gmra.mxu0 %vm234_vm0, %v221_v14  ;;  %890 = vmatmul.msk.bf16.vlgmr.msra.gmra.mxu2 %vm234_vm0, %v221_v14 }
  0x1f   : > { %881 = vmatmul.msk.bf16.vlgmr.msra.gmra.mxu1 %vm234_vm0, %v221_v14  ;;  %899 = vmatmul.msk.bf16.vlgmr.msra.gmra.mxu3 %vm234_vm0, %v221_v14 }
  0x9b   : > { %v247_v15 = vpop.f32.mrf.mxu0 }
  0x9c   : > { %v273_v16 = vpop.f32.mrf.mxu1  ;;  %v330_v17 = vpack.c.bf16 %v247_v15, %v247_v15 }
  0x9d   : > { %v332_v25 = vpack.c.bf16 %v273_v16, %v273_v16 }
  0x9e   : > { %v340_v21 = vunpack.c.l.b16 %v330_v17 }
  0x9f   : > { %v368_v30 = vunpack.c.l.b16 %v332_v25 }
  0xa1   : > { %v299_v18 = vpop.f32.mrf.mxu2 }
  0xa2   : > { %v325_v19 = vpop.f32.mrf.mxu3  ;;  %v334_v27 = vpack.c.bf16 %v299_v18, %v299_v18 }
  0xa3   : > { %v249_v20 = vpop.f32.mrf.mxu0  ;;  %v336_v36 = vpack.c.bf16 %v325_v19, %v325_v19 }
  0xa4   : > { %v331_v22 = vpack.c.bf16 %v249_v20, %v249_v20  ;;  %v275_v23 = vpop.f32.mrf.mxu1  ;;  %v395_v34 = vunpack.c.l.b16 %v334_v27 }
  0xa5   : > { %v333_v26 = vpack.c.bf16 %v275_v23, %v275_v23  ;;  %v422_v40 = vunpack.c.l.b16 %v336_v36 }
  0xa6   : > { %v341_v24 = vunpack.c.l.b16 %v331_v22 }
  0xa7   : > { %v369_v32 = vunpack.c.l.b16 %v333_v26 }
  0xa8   : > { %v1177_v28 = vpack.c.b16 %v341_v24, %v340_v21 }
  0xa9   : > { %v301_v29 = vpop.f32.mrf.mxu2  ;;  %v1180_v39 = vpack.c.b16 %v369_v32, %v368_v30 }
  0xaa   : > { %v335_v31 = vpack.c.bf16 %v301_v29, %v301_v29  ;;  %343 = vrot.lane.b32.xlu1 %v1177_v28, %s1067_s5  ;;  %v327_v33 = vpop.f32.mrf.mxu3 }
  0xab   : > { %v337_v37 = vpack.c.bf16 %v327_v33, %v327_v33 }
  0xac   : > { %v396_v35 = vunpack.c.l.b16 %v335_v31 }
  0xad   : > { %v423_v41 = vunpack.c.l.b16 %v337_v37 }
  0xae   : > { %v397_v38 = vpack.c.b16 %v396_v35, %v395_v34 }
  0xaf   : > { %v1183_v42 = vpack.c.b16 %v423_v41, %v422_v40 }
  0xb0   : > { %398 = vrot.lane.b32.xlu0 %v397_v38, %s1067_s5 }
  0xb2   : > { %371 = vrot.lane.b32.xlu1 %v1180_v39, %s1067_s5 }
  0xb8   : > { %425 = vrot.lane.b32.xlu0 %v1183_v42, %s1067_s5  ;;  %s791_s5 = scalar_lea.hbm %s1313_s4, %s926_s28 }
  0xb9   : > { %s794_s7 = sshll.u32 %s791_s5, 4  ;;  %s795_s7 = int_to_ptr.hbm [resolvable:$true] %s794_s7 }
  0xba   : > { %s1017_s9 = sshra.s32 %s795_s7, 4  ;;  %s1018_s9 = int_to_ptr.hbm [resolvable:$true] %s1017_s9 }
  0xbb   : > { %s1019_s10 = scalar_lea.hbm %s1018_s9, 16  ;;  %p1024_p0 = scmp.lt.s32.totalorder %s1018_s9, %s1313_s4 }
  0xbc   : > { %p1020_p11 = scmp.ne.s32.totalorder %s1018_s9, %s1019_s10  ;;  %p1025_p1 = scmp.lt.s32.totalorder %s1023_s13, %s1019_s10 }
  0xbe   : > { %p1021_p12 = pnand %p1020_p11, %p1134_p5  ;;  %p1026_p2 = por %p1025_p1, %p1024_p0 }
  0xc0   : > { %p1022_p13 = pneg %p1021_p12 }
  0xc2   : > { %p1027_p3 = pnand %p1026_p2, %p1022_p13 }
 0x11c   : > { %v344_v43 = vpop.permute.xlu1 %343 }
 0x11d   : > { %v350_v44 = vsel %vm345_vm1, %v344_v43, 0 }
 0x11e   : > { %359 = vmatpush.bf16.xpose.msrb.mxu0 %v350_v44 }
 0x122   : > { %v399_v45 = vpop.permute.xlu0 %398 }
 0x123   : > { %v404_v46 = vsel %vm345_vm1, %v399_v45, 0 }
 0x124   : > { %413 = vmatpush.bf16.xpose.msrb.mxu2 %v404_v46  ;;  %v372_v47 = vpop.permute.xlu1 %371 }
 0x125   : > { %900 = vmatmul.msk.bf16.vlgmr.msrb.gmra.mxu0 %vm345_vm1, %v1177_v28  ;;  %v377_v48 = vsel %vm345_vm1, %v372_v47, 0 }
 0x126   : > { %386 = vmatpush.bf16.xpose.msrb.mxu1 %v377_v48 }
 0x12a   : > { %v426_v49 = vpop.permute.xlu0 %425 }
 0x12b   : > { %902 = vmatmul.msk.bf16.vlgmr.msrb.gmra.mxu2 %vm345_vm1, %v397_v38  ;;  %v431_v50 = vsel %vm345_vm1, %v426_v49, 0 }
 0x12c   : > { %440 = vmatpush.bf16.xpose.msrb.mxu3 %v431_v50 }
 0x12d   : > { %901 = vmatmul.msk.bf16.vlgmr.msrb.gmra.mxu1 %vm345_vm1, %v1180_v39 }
 0x133   : > { %903 = vmatmul.msk.bf16.vlgmr.msrb.gmra.mxu3 %vm345_vm1, %v1183_v42 }
 0x1a2   : > { %v361_v57 = vpop.f32.mrf.mxu0 }
 0x1a3   : > { %v448_v60 = vsel %vm447_vm2, %v361_v57, -inf }
 0x1aa   : > { %v363_v61 = vpop.f32.mrf.mxu0  ;;  %v388_v63 = vpop.f32.mrf.mxu1 }
 0x1ab   : > { %v451_v62 = vsel %vm447_vm2, %v363_v61, -inf  ;;  %v454_v0 = vsel %vm447_vm2, %v388_v63, -inf }
 0x1ae   : > { %v1197_v51 = vpop.f32.mrf.mxu2 }
 0x1af   : > { %v460_v52 = vsel %vm447_vm2, %v1197_v51, -inf }
 0x1b0   : > { %461 = vmax.xlane.f32.xlu2 %v460_v52 }
 0x1b2   : > { %v390_v1 = vpop.f32.mrf.mxu1 }
 0x1b3   : > { %v457_v2 = vsel %vm447_vm2, %v390_v1, -inf }
 0x1b6   : > { %v1201_v53 = vpop.f32.mrf.mxu2  ;;  %v442_v54 = vpop.f32.mrf.mxu3 }
 0x1b7   : > { %v463_v55 = vsel %vm447_vm2, %v1201_v53, -inf  ;;  %v466_v56 = vsel %vm447_vm2, %v442_v54, -inf }
 0x1b8   : > { %464 = vmax.xlane.f32.xlu2 %v463_v55  ;;  %467 = vmax.xlane.f32.xlu0 %v466_v56 }
 0x1be   : > { %v444_v58 = vpop.f32.mrf.mxu3 }
 0x1bf   : > { %v469_v59 = vsel %vm447_vm2, %v444_v58, -inf }
 0x1c0   : > { %470 = vmax.xlane.f32.xlu1 %v469_v59  ;;  %449 = vmax.xlane.f32.xlu2 %v448_v60 }
 0x1c8   : > { %452 = vmax.xlane.f32.xlu2 %v451_v62 }
 0x1cc   : > { %599 = vrot.lane.b32.xlu0 %v397_v38, %s1068_s6 }
 0x1d0   : > { %455 = vmax.xlane.f32.xlu2 %v454_v0 }
 0x1d8   : > { %458 = vmax.xlane.f32.xlu2 %v457_v2 }
 0x223   : > { %v462_v3 = vpop.xlane.xlu2 %461 }
 0x224   : > { %v476_v30 = vsub.f32 %v1197_v51, %v462_v3 }
 0x226   : > { %v488_v34 = vmul.f32 1.442695, %v476_v30  ;;  %v652_v30 = vld [vmem:[%s1311_s2] sm:$0xf] }
 0x22b   : > { %v465_v4 = vpop.xlane.xlu2 %464  ;;  %v468_v7 = vpop.xlane.xlu0 %467 }
 0x22c   : > { %v478_v12 = vsub.f32 %v442_v54, %v468_v7  ;;  %v477_v37 = vsub.f32 %v1201_v53, %v465_v4 }
 0x22e   : > { %v492_v16 = vmul.f32 1.442695, %v478_v12  ;;  %v490_v41 = vmul.f32 1.442695, %v477_v37 }
 0x233   : > { %v450_v5 = vpop.xlane.xlu2 %449  ;;  %v471_v17 = vpop.xlane.xlu1 %470 }
 0x234   : > { %v472_v6 = vsub.f32 %v361_v57, %v450_v5  ;;  %v479_v21 = vsub.f32 %v444_v58, %v471_v17 }
 0x236   : > { %v480_v8 = vmul.f32 1.442695, %v472_v6  ;;  %v494_v24 = vmul.f32 1.442695, %v479_v21 }
 0x238   : > { %971 = vpow2.f32 %v480_v8 }
 0x23b   : > { %v453_v9 = vpop.xlane.xlu2 %452 }
 0x23c   : > { %v473_v10 = vsub.f32 %v363_v61, %v453_v9 }
 0x23e   : > { %v1212_v11 = vpop.eup %971  ;;  %v482_v13 = vmul.f32 1.442695, %v473_v10  ;;  %v600_v14 = vpop.permute.xlu0 %599 }
 0x23f   : > { %612 = vmatpush.bf16.msra.mxu2 %v600_v14  ;;  %v496_v15 = vsel %vm447_vm2, %v1212_v11, 0.0 }
 0x240   : > { %973 = vpow2.f32 %v482_v13  ;;  %497 = vadd.xlane.f32.xlu2 %v496_v15 }
 0x241   : > { %975 = vpow2.f32 %v492_v16 }
 0x243   : > { %v456_v18 = vpop.xlane.xlu2 %455 }
 0x244   : > { %v474_v19 = vsub.f32 %v388_v63, %v456_v18 }
 0x246   : > { %v1216_v20 = vpop.eup %973  ;;  %v484_v22 = vmul.f32 1.442695, %v474_v19 }
 0x247   : > { %v499_v23 = vsel %vm447_vm2, %v1216_v20, 0.0  ;;  %v1220_v26 = vpop.eup %975 }
 0x248   : > { %977 = vpow2.f32 %v484_v22  ;;  %500 = vadd.xlane.f32.xlu0 %v499_v23  ;;  %v514_v32 = vsel %vm447_vm2, %v1220_v26, 0.0 }
 0x249   : > { %979 = vpow2.f32 %v494_v24 }
 0x24b   : > { %v459_v25 = vpop.xlane.xlu2 %458 }
 0x24c   : > { %v475_v27 = vsub.f32 %v390_v1, %v459_v25 }
 0x24e   : > { %v978_v29 = vpop.eup %977  ;;  %v486_v31 = vmul.f32 1.442695, %v475_v27  ;;  %v653_v27 = vld [vmem:[%s1311_s2 + $0x4] sm:$0xf] }
 0x24f   : > { %v502_v33 = vsel %vm447_vm2, %v978_v29, 0.0  ;;  %v980_v35 = vpop.eup %979 }
 0x250   : > { %981 = vpow2.f32 %v486_v31  ;;  %515 = vadd.xlane.f32.xlu0 %v514_v32  ;;  %503 = vadd.xlane.f32.xlu1 %v502_v33  ;;  %v517_v40 = vsel %vm447_vm2, %v980_v35, 0.0  ;;  %v666_v31 = vsel %vm664_vm3, %v652_v30, 0  ;;  %v655_v32 = vld [vmem:[%s1311_s2 + $0xc] sm:$0xf] }
 0x251   : > { %983 = vpow2.f32 %v488_v34  ;;  %v741_v33 = vsel %vm664_vm3, %v655_v32, 0 }
 0x252   : > { %985 = vpow2.f32 %v490_v41 }
 0x256   : > { %v982_v36 = vpop.eup %981 }
 0x257   : > { %v505_v38 = vsel %vm447_vm2, %v982_v36, 0.0  ;;  %v984_v43 = vpop.eup %983 }
 0x258   : > { %506 = vadd.xlane.f32.xlu2 %v505_v38  ;;  %518 = vadd.xlane.f32.xlu1 %v517_v40  ;;  %v508_v44 = vsel %vm447_vm2, %v984_v43, 0.0  ;;  %v986_v45 = vpop.eup %985 }
 0x259   : > { %v511_v46 = vsel %vm447_vm2, %v986_v45, 0.0 }
 0x260   : > { %509 = vadd.xlane.f32.xlu2 %v508_v44 }
 0x264   : > { %574 = vrot.lane.b32.xlu0 %v1180_v39, %s1068_s6 }
 0x268   : > { %512 = vadd.xlane.f32.xlu2 %v511_v46 }
 0x271   : > { %624 = vrot.lane.b32.xlu1 %v1183_v42, %s1068_s6 }
 0x280   : > { %549 = vrot.lane.b32.xlu2 %v1177_v28, %s1068_s6  ;;  %s190_s6 = scalar_lea.vmem [#allocation2], %s861_s22 }
 0x281   : > { %s792_s19 = sshll.u32 %s190_s6, 4  ;;  %s793_s19 = int_to_ptr.vmem [resolvable:$true] %s792_s19 }
 0x2b3   : > { %v498_v47 = vpop.xlane.xlu2 %497 }
 0x2bb   : > { %v501_v49 = vpop.xlane.xlu0 %500 }
 0x2c3   : > { %v504_v48 = vpop.xlane.xlu1 %503  ;;  %v516_v53 = vpop.xlane.xlu0 %515 }
 0x2c4   : > { %987 = vrcp.f32 %v504_v48 }
 0x2ca   : > { %v988_v51 = vpop.eup %987 }
 0x2cb   : > { %v507_v50 = vpop.xlane.xlu2 %506  ;;  %v519_v52 = vpop.xlane.xlu1 %518  ;;  %v530_v39 = vmul.f32 %v988_v51, %v978_v29  ;;  %v691_v29 = vsel %vm664_vm3, %v653_v27, 0 }
 0x2cc   : > { %989 = vrcp.f32 %v507_v50 }
 0x2cd   : > { %991 = vrcp.f32 %v501_v49  ;;  %v538_v55 = vpack.c.bf16 %v530_v39, %v530_v39 }
 0x2ce   : > { %993 = vrcp.f32 %v519_v52 }
 0x2cf   : > { %995 = vrcp.f32 %v498_v47  ;;  %v571_v61 = vunpack.c.l.b16 %v538_v55 }
 0x2d0   : > { %997 = vrcp.f32 %v516_v53 }
 0x2d2   : > { %v990_v54 = vpop.eup %989 }
 0x2d3   : > { %v531_v42 = vmul.f32 %v990_v54, %v982_v36  ;;  %v510_v56 = vpop.xlane.xlu2 %509  ;;  %v992_v57 = vpop.eup %991 }
 0x2d4   : > { %v994_v58 = vpop.eup %993  ;;  %999 = vrcp.f32 %v510_v56  ;;  %v529_v0 = vmul.f32 %v992_v57, %v1216_v20 }
 0x2d5   : > { %v539_v28 = vpack.c.bf16 %v531_v42, %v531_v42  ;;  %v996_v60 = vpop.eup %995  ;;  %v535_v2 = vmul.f32 %v994_v58, %v980_v35  ;;  %v654_v35 = vld [vmem:[%s1311_s2 + $0x8] sm:$0xf] }
 0x2d6   : > { %v575_v59 = vpop.permute.xlu0 %574  ;;  %v998_v63 = vpop.eup %997  ;;  %v528_v3 = vmul.f32 %v996_v60, %v1212_v11  ;;  %v537_v7 = vpack.c.bf16 %v529_v0, %v529_v0  ;;  %v716_v36 = vsel %vm664_vm3, %v654_v35, 0 }
 0x2d7   : > { %v572_v62 = vunpack.c.l.b16 %v539_v28  ;;  %587 = vmatpush.bf16.msra.mxu1 %v575_v59  ;;  %v534_v4 = vmul.f32 %v998_v63, %v1220_v26  ;;  %v543_v8 = vpack.c.bf16 %v535_v2, %v535_v2  ;;  %725 = vmatpush.bf16.msrb.mxu2 %v716_v36 }
 0x2d8   : > { %v536_v9 = vpack.c.bf16 %v528_v3, %v528_v3  ;;  %v547_v13 = vunpack.c.l.b16 %v537_v7 }
 0x2d9   : > { %v573_v1 = vpack.c.b16 %v572_v62, %v571_v61  ;;  %v542_v10 = vpack.c.bf16 %v534_v4, %v534_v4  ;;  %v622_v14 = vunpack.c.l.b16 %v543_v8 }
 0x2da   : > { %v1000_v6 = vpop.eup %999  ;;  %v546_v16 = vunpack.c.l.b16 %v536_v9  ;;  %v970_v9 = vld [vmem:[%s1312_s3] ss:$0 sm:$0xff] }
 0x2db   : > { %v513_v5 = vpop.xlane.xlu2 %512  ;;  %905 = vmatmul.msk.bf16.vlgmr.msra.gmra.mxu1 %vm447_vm2, %v573_v1  ;;  %v532_v12 = vmul.f32 %v1000_v6, %v984_v43  ;;  %v621_v17 = vunpack.c.l.b16 %v542_v10 }
 0x2dc   : > { %1001 = vrcp.f32 %v513_v5  ;;  %v548_v21 = vpack.c.b16 %v547_v13, %v546_v16  ;;  %700 = vmatpush.bf16.msrb.mxu1 %v691_v29 }
 0x2dd   : > { %v540_v18 = vpack.c.bf16 %v532_v12, %v532_v12  ;;  %v623_v22 = vpack.c.b16 %v622_v14, %v621_v17 }
 0x2df   : > { %v596_v24 = vunpack.c.l.b16 %v540_v18 }
 0x2e2   : > { %v1002_v15 = vpop.eup %1001 }
 0x2e3   : > { %v533_v19 = vmul.f32 %v1002_v15, %v986_v45  ;;  %v550_v11 = vpop.permute.xlu2 %549  ;;  %v625_v20 = vpop.permute.xlu1 %624 }
 0x2e4   : > { %562 = vmatpush.bf16.msra.mxu0 %v550_v11  ;;  %637 = vmatpush.bf16.msra.mxu3 %v625_v20 }
 0x2e5   : > { %v541_v23 = vpack.c.bf16 %v533_v19, %v533_v19 }
 0x2e7   : > { %v597_v25 = vunpack.c.l.b16 %v541_v23  ;;  %904 = vmatmul.msk.bf16.vlgmr.msra.gmra.mxu0 %vm447_vm2, %v548_v21  ;;  %907 = vmatmul.msk.bf16.vlgmr.msra.gmra.mxu3 %vm447_vm2, %v623_v22 }
 0x2e8   : > { %675 = vmatpush.bf16.msrb.mxu0 %v666_v31  ;;  %750 = vmatpush.bf16.msrb.mxu3 %v741_v33 }
 0x2e9   : > { %v598_v26 = vpack.c.b16 %v597_v25, %v596_v24 }
 0x2eb   : > { %906 = vmatmul.msk.bf16.vlgmr.msra.gmra.mxu2 %vm447_vm2, %v598_v26 }
 0x358   : > { %v589_v34 = vpop.f32.mrf.mxu1 }
 0x359   : > { %v646_v37 = vpack.c.bf16 %v589_v34, %v589_v34 }
 0x35b   : > { %v684_v41 = vunpack.c.l.b16 %v646_v37 }
 0x360   : > { %v591_v38 = vpop.f32.mrf.mxu1 }
 0x361   : > { %v647_v40 = vpack.c.bf16 %v591_v38, %v591_v38 }
 0x363   : > { %v685_v43 = vunpack.c.l.b16 %v647_v40 }
 0x364   : > { %v564_v44 = vpop.f32.mrf.mxu0 }
 0x365   : > { %v686_v45 = vpack.c.b16 %v685_v43, %v684_v41  ;;  %v644_v47 = vpack.c.bf16 %v564_v44, %v564_v44 }
 0x367   : > { %909 = vmatmul.msk.bf16.vlgmr.msrb.gmra.mxu1 %vm345_vm1, %v686_v45  ;;  %v658_v51 = vunpack.c.l.b16 %v644_v47 }
 0x36a   : > { %v639_v46 = vpop.f32.mrf.mxu3 }
 0x36b   : > { %v650_v53 = vpack.c.bf16 %v639_v46, %v639_v46 }
 0x36c   : > { %v566_v48 = vpop.f32.mrf.mxu0 }
 0x36d   : > { %v645_v49 = vpack.c.bf16 %v566_v48, %v566_v48  ;;  %v734_v42 = vunpack.c.l.b16 %v650_v53 }
 0x36e   : > { %v614_v50 = vpop.f32.mrf.mxu2 }
 0x36f   : > { %v659_v52 = vunpack.c.l.b16 %v645_v49  ;;  %v648_v56 = vpack.c.bf16 %v614_v50, %v614_v50 }
 0x371   : > { %v660_v39 = vpack.c.b16 %v659_v52, %v658_v51  ;;  %v709_v60 = vunpack.c.l.b16 %v648_v56 }
 0x372   : > { %v641_v54 = vpop.f32.mrf.mxu3 }
 0x373   : > { %v651_v55 = vpack.c.bf16 %v641_v54, %v641_v54  ;;  %908 = vmatmul.msk.bf16.vlgmr.msrb.gmra.mxu0 %vm345_vm1, %v660_v39 }
 0x375   : > { %v735_v57 = vunpack.c.l.b16 %v651_v55 }
 0x376   : > { %v616_v28 = vpop.f32.mrf.mxu2 }
 0x377   : > { %v736_v58 = vpack.c.b16 %v735_v57, %v734_v42  ;;  %v649_v59 = vpack.c.bf16 %v616_v28, %v616_v28 }
 0x379   : > { %v710_v61 = vunpack.c.l.b16 %v649_v59  ;;  %911 = vmatmul.msk.bf16.vlgmr.msrb.gmra.mxu3 %vm345_vm1, %v736_v58 }
 0x37b   : > { %v711_v62 = vpack.c.b16 %v710_v61, %v709_v60 }
 0x37d   : > { %910 = vmatmul.msk.bf16.vlgmr.msrb.gmra.mxu2 %vm345_vm1, %v711_v62 }
 0x3e4   : > { %v702_v0 = vpop.f32.mrf.mxu1 }
 0x3e5   : > { %v758_v3 = vsel %vm234_vm0, %v702_v0, 0.0 }
 0x3ec   : > { %v704_v12 = vpop.f32.mrf.mxu1 }
 0x3ed   : > { %v765_v16 = vsel %vm234_vm0, %v704_v12, 0.0 }
 0x3f0   : > { %v677_v63 = vpop.f32.mrf.mxu0 }
 0x3f1   : > { %v757_v1 = vsel %vm234_vm0, %v677_v63, 0.0 }
 0x3f2   : > { %v759_v4 = vadd.f32 %v758_v3, %v757_v1 }
 0x3f8   : > { %v679_v7 = vpop.f32.mrf.mxu0 }
 0x3f9   : > { %v764_v14 = vsel %vm234_vm0, %v679_v7, 0.0 }
 0x3fa   : > { %v766_v17 = vadd.f32 %v765_v16, %v764_v14 }
 0x3fc   : > { %v752_v2 = vpop.f32.mrf.mxu3 }
 0x3fd   : > { %v762_v10 = vsel %vm234_vm0, %v752_v2, 0.0 }
 0x400   : > { %v727_v5 = vpop.f32.mrf.mxu2 }
 0x401   : > { %v760_v6 = vsel %vm234_vm0, %v727_v5, 0.0 }
 0x402   : > { %v761_v8 = vadd.f32 %v760_v6, %v759_v4 }
 0x404   : > { %v763_v13 = vadd.f32 %v762_v10, %v761_v8  ;;  %v754_v18 = vpop.f32.mrf.mxu3 }
 0x405   : > { %v769_v21 = vsel %vm234_vm0, %v754_v18, 0.0 }
 0x406   : > { %v775_v15 = vadd.f32 %v970_v9, %v763_v13 }
 0x408   : > { %777 = vst.msk [vmem:[%s190_s6] sm:$0xff] %vm234_vm0, %v775_v15  ;;  %v729_v19 = vpop.f32.mrf.mxu2 }
 0x409   : > { %v767_v11 = vsel %vm234_vm0, %v729_v19, 0.0 }
 0x40a   : > { %v768_v20 = vadd.f32 %v767_v11, %v766_v17 }
 0x40c   : > { %v770_v22 = vadd.f32 %v769_v21, %v768_v20 }
 0x40e   : > { %v776_v23 = vadd.f32 %v970_v9, %v770_v22 }
 0x410   : > { %778 = vst.msk [vmem:[%s190_s6 + $0x8] sm:$0xff] %vm234_vm0, %v776_v23 }
 0x411   : > { %1030 = shalt.err (!%p1027_p3)
}
 0x412   : > { %s1069_s20 = smov 128   ;;  %s1070_s23 = smov 8  }
 0x413   : > { %927 = dma.vmem_to_hbm [thread:$0]  (%p1134_p5), %s793_s19, 256, %s795_s7, %s780_s8, %s1069_s20, %s1069_s20, %s1070_s23  }
 0x414 PF: > { %p933_p4 = scmp.ge.s32.totalorder %s1065_s18, 2  ;;  %s809_s27 = sand.u32 1, %s1053_s15  }
 0x415   : > { %s810_s28 = scalar_lea.sflag [#allocation3], %s809_s27 }
 0x416   : > { %p930_p7 = pnand %p933_p4, %p1138_p6 }
 0x418   : > { %p931_p8 = pneg %p930_p7 }
 0x41a   : > { %1048 = dma.done.wait (%p931_p8), %s810_s28, 256  }
 0x41b   : > { %1050 = vsyncadd (%p931_p8), %s810_s28, 4294967040  ;;  %p14_p9 = scmp.ge.s32.totalorder %s1121_s21, 4   ;;  %s1316_s15 = smov %s1057_s16 }
 0x41c   : > { %s1317_s16 = smov %s1061_s17  ;;  %s1318_s17 = smov %s1132_s24 }
 0x41d   : > { %s1319_s18 = smov %s1121_s21  ;;  %16 = sbr.rel (!%p14_p9) target bundleno = 3 (0x3), region = 71 }
 0x422   :  { %816 = vsyncpa [#allocation3], 1 }
 0x423   :  { %818 = vsyncpa [#allocation3 + $0x1], 1 }

</bundles_post_ra>
